<compile_context>
chip_gen: v5e
topology: v5e:2x2
jax: 0.10.0
libtpu: 0.0.40
codegen_flags: <defaults>
</compile_context>

<pallas_src>
import jax
import jax.numpy as jnp
from jax.experimental import pallas as pl
from jax.experimental.pallas import tpu as pltpu


def _mlp_kernel(x_ref, w1_ref, b1_ref, w2_ref, b2_ref, w3_ref, b3_ref, o_ref):
    # Layer 1: bf16 MXU matmul, f32 accumulate; bias + ReLU on the f32 acc.
    h1 = jnp.dot(x_ref[...], w1_ref[...], preferred_element_type=jnp.float32)
    h1 = jnp.maximum(h1 + b1_ref[...], 0.0)

    # Layer 2: cast activation to bf16 only as MXU operand; stay f32 elsewhere.
    h2 = jnp.dot(h1.astype(jnp.bfloat16), w2_ref[...],
                 preferred_element_type=jnp.float32)
    h2 = jnp.maximum(h2 + b2_ref[...], 0.0)

    # Layer 3 (out_features == 1): VPU multiply + lane reduction instead of a
    # 1-column MXU matmul; scalar bias read from SMEM.
    out = jnp.sum(h2 * w3_ref[...], axis=-1, keepdims=True) + b3_ref[0, 0]
    o_ref[...] = out.astype(o_ref.dtype)


def hybrid_classifier_forward(x, params, *, tile_b=None):
    """Fused MLP forward. x: (B, input_size) float32 -> (B, 1) float32."""
    w1, b1, w2, b2, w3, b3 = params
    B, input_size = x.shape
    H1 = w1.shape[1]   # 256
    H2 = w2.shape[1]   # 128

    # bf16 operands for the MXU (f32 accumulation inside the kernel).
    x_bf = x.astype(jnp.bfloat16)
    w1_bf = w1.astype(jnp.bfloat16)
    w2_bf = w2.astype(jnp.bfloat16)
    w3_row = w3.reshape(1, H2).astype(jnp.float32)   # used on the VPU in f32
    b3_s = b3.reshape(1, 1).astype(jnp.float32)      # scalar bias -> SMEM

    # Tile the batch. Big tiles amortize the ~0.35 us/step overhead; keep the
    # per-step footprint (double-buffered x tile + f32 intermediates) around a
    # few MiB so it fits the smaller scoped-VMEM budget on v7x as well.
    if tile_b is None:
        per_row_bytes = 2 * input_size * 2 + (H1 + H2) * 4 + 4
        tile_b = max(8, min(1024, (4 << 20) // max(per_row_bytes, 1)))
        tile_b = (tile_b // 8) * 8
    tile_b = min(tile_b, max(8, ((B + 7) // 8) * 8))

    # Pad batch to a multiple of tile_b (padded rows computed then dropped).
    num_tiles = pl.cdiv(B, tile_b)
    B_pad = num_tiles * tile_b
    if B_pad != B:
        x_bf = jnp.pad(x_bf, ((0, B_pad - B), (0, 0)))

    cost = pl.CostEstimate(
        flops=2 * B_pad * (input_size * H1 + H1 * H2 + H2),
        transcendentals=0,
        bytes_accessed=(B_pad * input_size * 2            # x (bf16)
                        + input_size * H1 * 2 + H1 * H2 * 2   # W1, W2 (bf16)
                        + (H1 + H2 + 1) * 4 + H2 * 4          # biases + w3 row
                        + B_pad * 4),                          # output
    )

    out = pl.pallas_call(
        _mlp_kernel,
        out_shape=jax.ShapeDtypeStruct((B_pad, 1), jnp.float32),
        grid=(num_tiles,),
        in_specs=[
            pl.BlockSpec((tile_b, input_size), lambda i: (i, 0)),   # x tile
            pl.BlockSpec((input_size, H1), lambda i: (0, 0)),       # W1 (resident)
            pl.BlockSpec((1, H1), lambda i: (0, 0)),                # b1 (resident)
            pl.BlockSpec((H1, H2), lambda i: (0, 0)),               # W2 (resident)
            pl.BlockSpec((1, H2), lambda i: (0, 0)),                # b2 (resident)
            pl.BlockSpec((1, H2), lambda i: (0, 0)),                # W3 row (resident)
            pl.BlockSpec(memory_space=pltpu.SMEM),                  # b3 scalar
        ],
        out_specs=pl.BlockSpec((tile_b, 1), lambda i: (i, 0)),
        compiler_params=pltpu.CompilerParams(
            dimension_semantics=("parallel",)),
        cost_estimate=cost,
    )(x_bf, w1_bf, b1, w2_bf, b2, w3_row, b3_s)

    return out[:B] if B_pad != B else out


def init_params(key, input_size):
    """Deterministic init matching nn.Linear shapes (stored as (in, out))."""
    k1, k2, k3 = jax.random.split(key, 3)

    def linear_init(k, fan_in, fan_out):
        bound = 1.0 / jnp.sqrt(jnp.float32(fan_in))
        kw, kb = jax.random.split(k)
        w = jax.random.uniform(kw, (fan_in, fan_out), jnp.float32, -bound, bound)
        b = jax.random.uniform(kb, (1, fan_out), jnp.float32, -bound, bound)
        return w, b

    w1, b1 = linear_init(k1, input_size, 256)
    w2, b2 = linear_init(k2, 256, 128)
    w3, b3 = linear_init(k3, 128, 1)
    return (w1, b1, w2, b2, w3, b3)


def reference_forward(x, params):
    """Pure-JAX reference mimicking the kernel's bf16-operand / f32-acc path."""
    w1, b1, w2, b2, w3, b3 = params
    h1 = jnp.dot(x.astype(jnp.bfloat16), w1.astype(jnp.bfloat16),
                 preferred_element_type=jnp.float32)
    h1 = jnp.maximum(h1 + b1, 0.0)
    h2 = jnp.dot(h1.astype(jnp.bfloat16), w2.astype(jnp.bfloat16),
                 preferred_element_type=jnp.float32)
    h2 = jnp.maximum(h2 + b2, 0.0)
    return jnp.sum(h2 * w3.reshape(1, -1), axis=-1, keepdims=True) + b3.reshape(1, 1)


if __name__ == "__main__":
    key = jax.random.PRNGKey(0)
    kx, kp = jax.random.split(key)

    batch = 8
    input_size = 32

    x = jax.random.normal(kx, (batch, input_size), jnp.float32)
    params = init_params(kp, input_size)

    out = hybrid_classifier_forward(x, params)
    out = jax.block_until_ready(out)

    ref = reference_forward(x, params)
    assert out.shape == (batch, 1), out.shape
    assert jnp.allclose(out, ref, atol=1e-2, rtol=1e-2), "mismatch vs reference"

    print("KERNEL_OK")
</pallas_src>

<mosaic_0001>
module attributes {stable_mosaic.version = 11 : i64} {
  func.func @_mlp_kernel(%arg0: i32, %arg1: memref<8x32xbf16, #tpu.memory_space<vmem>>, %arg2: memref<32x256xbf16, #tpu.memory_space<vmem>>, %arg3: memref<1x256xf32, #tpu.memory_space<vmem>>, %arg4: memref<256x128xbf16, #tpu.memory_space<vmem>>, %arg5: memref<1x128xf32, #tpu.memory_space<vmem>>, %arg6: memref<1x128xf32, #tpu.memory_space<vmem>>, %arg7: memref<1x1xf32, #tpu.memory_space<smem>>, %arg8: memref<8x1xf32, #tpu.memory_space<vmem>>) attributes {dimension_semantics = [#tpu.dimension_semantics<parallel>], iteration_bounds = array<i64: 1>, scalar_prefetch = 0 : i64, scratch_operands = 0 : i64, tpu.core_type = #tpu.core_type<tc>, window_params = [{transform_indices = @transform_0, window_bounds = array<i64: 8, 32>}, {pipeline_mode = #tpu.pipeline_mode<synchronous>, transform_indices = @transform_1, window_bounds = array<i64: 32, 256>}, {pipeline_mode = #tpu.pipeline_mode<synchronous>, transform_indices = @transform_2, window_bounds = array<i64: 1, 256>}, {pipeline_mode = #tpu.pipeline_mode<synchronous>, transform_indices = @transform_3, window_bounds = array<i64: 256, 128>}, {pipeline_mode = #tpu.pipeline_mode<synchronous>, transform_indices = @transform_4, window_bounds = array<i64: 1, 128>}, {pipeline_mode = #tpu.pipeline_mode<synchronous>, transform_indices = @transform_5, window_bounds = array<i64: 1, 128>}, {transform_indices = @transform_6, window_bounds = array<i64: 1, 1>}, {transform_indices = @transform_7, window_bounds = array<i64: 8, 1>}]} {
    %c0 = arith.constant 0 : index
    %c0_0 = arith.constant 0 : index
    %0 = vector.load %arg1[%c0, %c0_0] : memref<8x32xbf16, #tpu.memory_space<vmem>>, vector<8x32xbf16>
    %c0_1 = arith.constant 0 : index
    %c0_2 = arith.constant 0 : index
    %1 = vector.load %arg2[%c0_1, %c0_2] : memref<32x256xbf16, #tpu.memory_space<vmem>>, vector<32x256xbf16>
    %cst = arith.constant dense<0.000000e+00> : vector<8x256xf32>
    %2 = tpu.matmul %0, %1, %cst {dimension_numbers = #tpu.dot_dimension_numbers<[1], [0], [0], [1], [0, 0, 1, 1], [], []>} : vector<8x32xbf16>, vector<32x256xbf16>, vector<8x256xf32> -> vector<8x256xf32>
    %c0_3 = arith.constant 0 : index
    %c0_4 = arith.constant 0 : index
    %3 = vector.load %arg3[%c0_3, %c0_4] : memref<1x256xf32, #tpu.memory_space<vmem>>, vector<1x256xf32>
    %4 = vector.broadcast %3 : vector<1x256xf32> to vector<8x256xf32>
    %5 = arith.addf %2, %4 : vector<8x256xf32>
    %cst_5 = arith.constant 0.000000e+00 : f32
    %6 = vector.broadcast %cst_5 : f32 to vector<8x256xf32>
    %7 = arith.maximumf %5, %6 : vector<8x256xf32>
    %8 = arith.truncf %7 : vector<8x256xf32> to vector<8x256xbf16>
    %c0_6 = arith.constant 0 : index
    %c0_7 = arith.constant 0 : index
    %9 = vector.load %arg4[%c0_6, %c0_7] : memref<256x128xbf16, #tpu.memory_space<vmem>>, vector<256x128xbf16>
    %cst_8 = arith.constant dense<0.000000e+00> : vector<8x128xf32>
    %10 = tpu.matmul %8, %9, %cst_8 {dimension_numbers = #tpu.dot_dimension_numbers<[1], [0], [0], [1], [0, 0, 1, 1], [], []>} : vector<8x256xbf16>, vector<256x128xbf16>, vector<8x128xf32> -> vector<8x128xf32>
    %c0_9 = arith.constant 0 : index
    %c0_10 = arith.constant 0 : index
    %11 = vector.load %arg5[%c0_9, %c0_10] : memref<1x128xf32, #tpu.memory_space<vmem>>, vector<1x128xf32>
    %12 = vector.broadcast %11 : vector<1x128xf32> to vector<8x128xf32>
    %13 = arith.addf %10, %12 : vector<8x128xf32>
    %cst_11 = arith.constant 0.000000e+00 : f32
    %14 = vector.broadcast %cst_11 : f32 to vector<8x128xf32>
    %15 = arith.maximumf %13, %14 : vector<8x128xf32>
    %c0_12 = arith.constant 0 : index
    %c0_13 = arith.constant 0 : index
    %16 = vector.load %arg6[%c0_12, %c0_13] : memref<1x128xf32, #tpu.memory_space<vmem>>, vector<1x128xf32>
    %17 = vector.broadcast %16 : vector<1x128xf32> to vector<8x128xf32>
    %18 = arith.mulf %15, %17 : vector<8x128xf32>
    %cst_14 = arith.constant dense<0.000000e+00> : vector<8xf32>
    %19 = vector.multi_reduction <add>, %18, %cst_14 [1] : vector<8x128xf32> to vector<8xf32>
    %20 = vector.shape_cast %19 : vector<8xf32> to vector<8x1xf32>
    %c0_15 = arith.constant 0 : index
    %c0_16 = arith.constant 0 : index
    %21 = memref.load %arg7[%c0_15, %c0_16] : memref<1x1xf32, #tpu.memory_space<smem>>
    %22 = vector.broadcast %21 : f32 to vector<8x1xf32>
    %23 = arith.addf %20, %22 : vector<8x1xf32>
    %c0_17 = arith.constant 0 : index
    %c0_18 = arith.constant 0 : index
    %24 = vector.load %arg8[%c0_17, %c0_18] : memref<8x1xf32, #tpu.memory_space<vmem>>, vector<8x1xf32>
    tpu.vector_store %arg8[%c0_17, %c0_18], %23 {strides = array<i32>} : memref<8x1xf32, #tpu.memory_space<vmem>>, vector<8x1xf32>,
    return
  }
  func.func @transform_0(%arg0: i32) -> (i32, i32) {
    %c0_i32 = arith.constant 0 : i32
    %c0_i32_0 = arith.constant 0 : i32
    return %arg0, %c0_i32 : i32, i32
  }
  func.func @transform_1(%arg0: i32) -> (i32, i32) {
    %c0_i32 = arith.constant 0 : i32
    %c0_i32_0 = arith.constant 0 : i32
    %c0_i32_1 = arith.constant 0 : i32
    return %c0_i32, %c0_i32_0 : i32, i32
  }
  func.func @transform_2(%arg0: i32) -> (i32, i32) {
    %c0_i32 = arith.constant 0 : i32
    %c0_i32_0 = arith.constant 0 : i32
    %c0_i32_1 = arith.constant 0 : i32
    return %c0_i32, %c0_i32_0 : i32, i32
  }
  func.func @transform_3(%arg0: i32) -> (i32, i32) {
    %c0_i32 = arith.constant 0 : i32
    %c0_i32_0 = arith.constant 0 : i32
    %c0_i32_1 = arith.constant 0 : i32
    return %c0_i32, %c0_i32_0 : i32, i32
  }
  func.func @transform_4(%arg0: i32) -> (i32, i32) {
    %c0_i32 = arith.constant 0 : i32
    %c0_i32_0 = arith.constant 0 : i32
    %c0_i32_1 = arith.constant 0 : i32
    return %c0_i32, %c0_i32_0 : i32, i32
  }
  func.func @transform_5(%arg0: i32) -> (i32, i32) {
    %c0_i32 = arith.constant 0 : i32
    %c0_i32_0 = arith.constant 0 : i32
    %c0_i32_1 = arith.constant 0 : i32
    return %c0_i32, %c0_i32_0 : i32, i32
  }
  func.func @transform_6(%arg0: i32) -> (i32, i32) {
    %c0_i32 = arith.constant 0 : i32
    %c0_i32_0 = arith.constant 0 : i32
    %c0_i32_1 = arith.constant 0 : i32
    return %c0_i32, %c0_i32_0 : i32, i32
  }
  func.func @transform_7(%arg0: i32) -> (i32, i32) {
    %c0_i32 = arith.constant 0 : i32
    %c0_i32_0 = arith.constant 0 : i32
    return %arg0, %c0_i32 : i32, i32
  }
}

</mosaic_0001>

<bundles_post_ra>
// kernel: tpu_custom_call.1
= control target key start
LH: loop header
LB: loop body
LE: loop exit
PB: predicated region body
PF: predicated region fallthrough
CT: control target
= control target key end

     0   :  { %13 = vsyncpa [#allocation4], 0  ;;  %s573_s0 = inlined_call_operand.hbm [shape: bf16[8,32], index: 0, kind: input, shape index: {}]   ;;  %s574_s1 = inlined_call_operand.hbm [shape: bf16[32,256], index: 1, kind: input, shape index: {}]   ;;  %s575_s2 = inlined_call_operand.vmem [shape: f32[1,256], index: 2, kind: input, shape index: {}]   ;;  %s576_s3 = inlined_call_operand.hbm [shape: bf16[256,128], index: 3, kind: input, shape index: {}]   ;;  %s577_s4 = inlined_call_operand.vmem [shape: f32[1,128], index: 4, kind: input, shape index: {}]   ;;  %s578_s5 = inlined_call_operand.vmem [shape: f32[1,128], index: 5, kind: input, shape index: {}]   ;;  %s579_s6 = inlined_call_operand.<no memory space> [shape: f32[1,1], index: 6, kind: input, shape index: {}]   ;;  %s580_s7 = inlined_call_operand.vmem [shape: f32[8,1], index: 7, kind: output, shape index: {}]  }
   0x1   :  { %14 = vsyncpa [#allocation6], 0  ;;  %s30_s26 = sshll.u32 %s574_s1, 4  ;;  %s502_s27 = smov [#allocation5]   ;;  %s31_s26 = int_to_ptr.hbm [resolvable:$true] %s30_s26 }
   0x2   :  { %s32_s28 = sshll.u32 %s502_s27, 4  ;;  %s20_s8 = sshll.u32 %s573_s0, 4  ;;  %s33_s28 = int_to_ptr.vmem [resolvable:$true] %s32_s28  ;;  %s21_s8 = int_to_ptr.hbm [resolvable:$true] %s20_s8 }
   0x3   :  { %s503_s9 = smov 128   ;;  %s504_s10 = smov 8  }
   0x4   :  { %38 = dma.hbm_to_vmem [thread:$0]  %s31_s26, 512, %s33_s28, [#allocation6], %s503_s9, %s503_s9, %s504_s10  }
   0x5   :  { %s505_s11 = smov [#allocation3]   ;;  %s45_s15 = sshll.u32 %s576_s3, 4  ;;  %s46_s15 = int_to_ptr.hbm [resolvable:$true] %s45_s15 }
   0x6   :  { %s22_s12 = sshll.u32 %s505_s11, 4  ;;  %s506_s1 = smov [#allocation7]   ;;  %s23_s12 = int_to_ptr.vmem [resolvable:$true] %s22_s12 }
   0x7   :  { %25 = dma.hbm_to_vmem [thread:$0]  %s21_s8, 64, %s23_s12, [#allocation4]  }
   0x8   :  { %s47_s16 = sshll.u32 %s506_s1, 4  ;;  %s507_s17 = smov 64   ;;  %s48_s16 = int_to_ptr.vmem [resolvable:$true] %s47_s16 }
   0x9   :  { %s508_s18 = smov 4  }
   0xa   :  { %53 = dma.hbm_to_vmem [thread:$0]  %s46_s15, 2048, %s48_s16, [#allocation6], %s507_s17, %s507_s17, %s508_s18  }
   0xb   :  { %498 = dma.done.wait [#allocation4], 64  }
   0xc   :  { %499 = vsyncadd [#allocation4], 4294967232 }
   0xd   :  { %500 = dma.done.wait [#allocation6], 2560  }
   0xe   :  { %501 = vsyncadd [#allocation6], 4294964736  ;;  %v325_v0 = vld [vmem:[#allocation5 + $0x10] sm:$0xf]  ;;  %v400_v1 = vld [vmem:[#allocation5 + $0x14] sm:$0xf0]  ;;  %v305_v52 = vstv %s579_s6 }
   0xf   :  { %v399_v2 = vld [vmem:[#allocation5 + $0x14] sm:$0xf]  ;;  %v326_v3 = vor.u32 %v400_v1, %v325_v0  ;;  %v327_v4 = vld [vmem:[#allocation5 + $0x18] sm:$0xf0]  ;;  %v317_v5 = vld [vmem:[#allocation5] sm:$0xf] }
  0x10   :  { %v398_v6 = vld [vmem:[#allocation5 + $0x4] sm:$0xf0]  ;;  %v330_v7 = vor.u32 %v399_v2, %v327_v4  ;;  %v397_v8 = vld [vmem:[#allocation5 + $0x4] sm:$0xf]  ;;  %v319_v9 = vld [vmem:[#allocation5 + $0x8] sm:$0xf0] }
  0x11   :  { %114 = vmatpush.bf16.msra.mxu0 %v326_v3  ;;  %v318_v10 = vor.u32 %v398_v6, %v317_v5  ;;  %v408_v11 = vld [vmem:[#allocation7 + $0x38] sm:$0xff]  ;;  %v322_v13 = vor.u32 %v397_v8, %v319_v9  ;;  %v407_v14 = vld [vmem:[#allocation7 + $0x30] sm:$0xff]  ;;  %vm104_vm0 = vcmask 261120   ;;  %v406_v17 = vld [vmem:[#allocation7 + $0x28] sm:$0xff]  ;;  %vm307_vm1 = vcmask 7168  }
  0x12   :  { %v416_v12 = vld [vmem:[#allocation7 + $0x78] sm:$0xff]  ;;  %127 = vmatpush.bf16.msra.mxu1 %v330_v7  ;;  %270 = vmatpush.bf16.msra.mxu2 %v408_v11  ;;  %v415_v15 = vld [vmem:[#allocation7 + $0x70] sm:$0xff]  ;;  %v414_v18 = vld [vmem:[#allocation7 + $0x68] sm:$0xff] }
  0x13   :  { %283 = vmatpush.bf16.msra.mxu3 %v416_v12  ;;  %v73_v16 = vld [vmem:[#allocation3] sm:$0xf]  ;;  %v405_v19 = vld [vmem:[#allocation7 + $0x20] sm:$0xff]  ;;  %v403_v23 = vld [vmem:[#allocation7 + $0x10] sm:$0xff] }
  0x14   :  { %v413_v20 = vld [vmem:[#allocation7 + $0x60] sm:$0xff]  ;;  %v404_v21 = vld [vmem:[#allocation7 + $0x18] sm:$0xff]  ;;  %v411_v24 = vld [vmem:[#allocation7 + $0x50] sm:$0xff] }
  0x15   :  { %115 = vmatpush.bf16.msra.mxu0 %v318_v10  ;;  %v412_v22 = vld [vmem:[#allocation7 + $0x58] sm:$0xff]  ;;  %v402_v25 = vld [vmem:[#allocation7 + $0x8] sm:$0xff]  ;;  %v401_v27 = vld [vmem:[#allocation7] sm:$0xff] }
  0x16   :  { %128 = vmatpush.bf16.msra.mxu1 %v322_v13  ;;  %271 = vmatpush.bf16.msra.mxu2 %v407_v14  ;;  %v410_v26 = vld [vmem:[#allocation7 + $0x48] sm:$0xff]  ;;  %v409_v28 = vld [vmem:[#allocation7 + $0x40] sm:$0xff]  ;;  %v78_v29 = vld [vmem:[%s575_s2] sm:$0x3] }
  0x17   :  { %284 = vmatpush.bf16.msra.mxu3 %v415_v15  ;;  %v80_v30 = vperm.slane %v78_v29, 0  ;;  %v81_v31 = vperm.slane %v78_v29, 1  ;;  %v424_v42 = vld [vmem:[%s577_s4] ss:$0 sm:$0xff] }
  0x18   :  { %331 = vmatmul.msk.bf16.vlgmr.msra.gmra.mxu0 %vm104_vm0, %v73_v16  ;;  %v425_v47 = vld [vmem:[%s578_s5] ss:$0 sm:$0xff] }
  0x19   :  { %332 = vmatmul.msk.bf16.vlgmr.msra.gmra.mxu1 %vm104_vm0, %v73_v16 }
  0x1a   :  { %272 = vmatpush.bf16.msra.mxu2 %v406_v17 }
  0x1b   :  { %285 = vmatpush.bf16.msra.mxu3 %v414_v18 }
  0x1e   :  { %273 = vmatpush.bf16.msra.mxu2 %v405_v19 }
  0x1f   :  { %286 = vmatpush.bf16.msra.mxu3 %v413_v20 }
  0x22   :  { %274 = vmatpush.bf16.msra.mxu2 %v404_v21 }
  0x23   :  { %287 = vmatpush.bf16.msra.mxu3 %v412_v22 }
  0x26   :  { %275 = vmatpush.bf16.msra.mxu2 %v403_v23 }
  0x27   :  { %288 = vmatpush.bf16.msra.mxu3 %v411_v24 }
  0x2a   :  { %276 = vmatpush.bf16.msra.mxu2 %v402_v25 }
  0x2b   :  { %289 = vmatpush.bf16.msra.mxu3 %v410_v26 }
  0x2e   :  { %277 = vmatpush.bf16.msra.mxu2 %v401_v27 }
  0x2f   :  { %290 = vmatpush.bf16.msra.mxu3 %v409_v28 }
  0x95   :  { %v117_v32 = vpop.f32.mrf.mxu0 }
  0x96   :  { %v118_v33 = vadd.f32 %v117_v32, %v80_v30  ;;  %v130_v34 = vpop.f32.mrf.mxu1 }
  0x97   :  { %v131_v35 = vadd.f32 %v130_v34, %v81_v31 }
  0x98   :  { %v134_v36 = vmax.f32 %v118_v33, 0.0 }
  0x99   :  { %v135_v37 = vmax.f32 %v131_v35, 0.0 }
  0x9a   :  { %v136_v38 = vpack.c.bf16 %v134_v36, %v134_v36 }
  0x9b   :  { %v137_v39 = vpack.c.bf16 %v135_v37, %v135_v37 }
  0x9c   :  { %278 = vmatmul.bf16.vlgmr.msra.gmra.mxu2 %v136_v38 }
  0x9d   :  { %291 = vmatmul.bf16.vlgmr.msra.gmra.mxu3 %v137_v39  ;;  %v119_v40 = vpop.f32.mrf.mxu0 }
  0x9e   :  { %v132_v41 = vpop.f32.mrf.mxu1 }
 0x11f   :  { %v279_v43 = vpop.f32.mrf.mxu2 }
 0x120   :  { %v280_v44 = vadd.f32 %v424_v42, %v279_v43  ;;  %v292_v45 = vpop.f32.mrf.mxu3 }
 0x122   :  { %v293_v46 = vadd.f32 %v292_v45, %v280_v44 }
 0x124   :  { %v296_v48 = vmax.f32 %v293_v46, 0.0 }
 0x126   :  { %v301_v49 = vmul.f32 %v425_v47, %v296_v48 }
 0x127   :  { %v281_v50 = vpop.f32.mrf.mxu2 }
 0x128   :  { %v294_v51 = vpop.f32.mrf.mxu3  ;;  %302 = vadd.xlane.f32.xlu0 %v301_v49 }
 0x19b   :  { %v303_v53 = vpop.xlane.xlu0 %302 }
 0x19c   :  { %v306_v54 = vadd.f32 %v305_v52, %v303_v53 }
 0x19e   :  { %308 = vst.msk [vmem:[%s580_s7] sm:$0xff] %vm307_vm1, %v306_v54 }
 0x19f   :  { %313 = vsyncpa [#allocation4], 1 }
 0x1a0   :  { %314 = vsyncpa [#allocation6], 1 }

</bundles_post_ra>
